<compile_context>
chip_gen: v7x
topology: tpu7x:2x2x1
jax: 0.10.0
libtpu: 0.0.40
codegen_flags: <defaults>
</compile_context>

<pallas_src>
import functools

import jax
import jax.numpy as jnp
from jax import lax
from jax.experimental import pallas as pl
from jax.experimental.pallas import tpu as pltpu


# ---------------------------------------------------------------------------
# Kernel
# ---------------------------------------------------------------------------
def encoder_conv_kernel(lens_ref, x_ref, bstk_ref, conv_ref, comb_ref, *,
                        seq_len, q_size, block_b, split_taps):
    """Windowed conv + per-sequence time-sum for one block of sequences.

    lens_ref : SMEM [B_pad]                int32 sequence lengths (prefetched)
    x_ref    : VMEM [rows, E]              rows = block_b * T, pre length-masked
    bstk_ref : VMEM [E, q*E]               stacked B matrices (col block k = B[k])
    conv_ref : VMEM [block_b, T, E]        conv outputs (bf16 / compute dtype)
    comb_ref : VMEM [1, block_b, E]        f32 per-sequence time-sum of conv
    """
    T = seq_len
    q = q_size
    half = q // 2
    E = conv_ref.shape[-1]
    rows = block_b * T

    x = x_ref[...]                                       # (rows, E)

    # Time index of every row inside its own sequence (rows are laid out
    # sequence-major: row r = sequence r // T, time r % T).
    t_seq = lax.broadcasted_iota(jnp.int32, (T, 1), 0)   # (T, 1)
    t_rows = jnp.concatenate([t_seq] * block_b, axis=0) if block_b > 1 else t_seq

    if not split_taps:
        # One wide MXU push keeps the MXU full when E < 256 lanes; the f32
        # temp is only rows * q * E * 4 bytes in this regime.
        y = jnp.dot(x, bstk_ref[...], preferred_element_type=jnp.float32)

    acc = jnp.zeros((rows, E), jnp.float32)
    for k in range(q):                                   # q is small & static
        d = k - half
        if split_taps:
            # Per-tap dot: the (rows, E) f32 product is consumed immediately,
            # bounding the compiler temp (important on 64 MiB-VMEM chips).
            yk = jnp.dot(x, bstk_ref[:, k * E:(k + 1) * E],
                         preferred_element_type=jnp.float32)
        else:
            yk = y[:, k * E:(k + 1) * E]                 # aligned lane slice
        if d == 0:
            acc = acc + yk
        else:
            # Time shift via sublane rotate on the XLU. Rows whose source time
            # index falls outside [0, T) wrapped across a sequence (or block)
            # boundary and are zeroed by the boundary mask. NOTE: correctness
            # also relies on x being pre-masked by sequence length in the
            # wrapper (rows past a sequence's true length must already be 0).
            yk = pltpu.roll(yk, shift=(-d) % rows, axis=0)
            boundary = ((t_rows + d >= 0) & (t_rows + d < T)).astype(jnp.float32)
            acc = acc + yk * boundary

    # Length mask applied once per sequence, fused with the output cast and
    # the per-sequence time reduction for the "combine" output.
    b0 = pl.program_id(0) * block_b
    comb_rows = []
    for s in range(block_b):                             # static, small
        len_s = lens_ref[b0 + s]
        lmask = (t_seq < len_s).astype(jnp.float32)      # (T, 1)
        seq = acc[s * T:(s + 1) * T, :] * lmask          # (T, E) f32
        conv_ref[s, :, :] = seq.astype(conv_ref.dtype)
        comb_rows.append(jnp.sum(seq, axis=0, keepdims=True))
    comb_ref[0] = jnp.concatenate(comb_rows, axis=0)     # (block_b, E) f32


# ---------------------------------------------------------------------------
# Resource budgeting (chip-aware)
# ---------------------------------------------------------------------------
def _vmem_capacity_bytes():
    try:
        info = pltpu.get_tpu_info()
        for attr in ("vmem_capacity_bytes", "vmem_bytes", "vmem_size_bytes"):
            v = getattr(info, attr, None)
            if v and int(v) >= (32 << 20):
                return int(v)
    except Exception:
        pass
    return 64 << 20          # conservative fallback (v7x per-TensorCore VMEM)


def _estimate_vmem_bytes(block_b, T_pad, E_pad, q, split_taps, itemsize):
    rows = block_b * T_pad
    x_bufs = 2 * rows * E_pad * itemsize                 # input block, double buffered
    conv_bufs = 2 * rows * E_pad * itemsize              # conv out block, double buffered
    comb_bufs = 2 * block_b * E_pad * 4                  # combine out, f32
    w_bufs = 2 * E_pad * q * E_pad * itemsize            # constant weight block (2 bufs)
    acc = rows * E_pad * 4                               # f32 accumulator
    mm_tmp = rows * E_pad * 4 if split_taps else rows * q * E_pad * 4
    misc = 2 << 20                                       # iotas, masks, scratch
    return x_bufs + conv_bufs + comb_bufs + w_bufs + acc + mm_tmp + misc


def _choose_block_b(B, T_pad, E_pad, q, split_taps, itemsize, vmem_cap, requested):
    # >= 2 grid steps whenever B >= 2 so dimension_semantics=("parallel",)
    # can spread the grid over both TensorCores on v7x-class chips.
    max_bb = max(1, -(-B // 2)) if B >= 2 else 1
    max_bb = min(max_bb, 16)                             # bound kernel unrolling
    if requested is not None:
        return max(1, min(int(requested), max_bb))
    budget = int(0.70 * vmem_cap)                        # leave compiler headroom
    bb = max_bb
    while bb > 1 and _estimate_vmem_bytes(bb, T_pad, E_pad, q,
                                          split_taps, itemsize) > budget:
        bb -= 1
    return bb


# ---------------------------------------------------------------------------
# Glue helpers
# ---------------------------------------------------------------------------
def positional_encoding(T, E, dtype=jnp.float32):
    """Standard sinusoidal positional encoding, [T, E]."""
    pos = jnp.arange(T, dtype=jnp.float32)[:, None]
    i = jnp.arange(E, dtype=jnp.float32)[None, :]
    rates = 1.0 / jnp.power(10000.0, (2.0 * jnp.floor(i / 2.0)) / E)
    angles = pos * rates
    even = (jnp.arange(E) % 2) == 0
    pe = jnp.where(even[None, :], jnp.sin(angles), jnp.cos(angles))
    return pe.astype(dtype)


def encoder_forward(tokens, input_lens, params, *, block_b=None,
                    compute_dtype=jnp.bfloat16, unpad_outputs=False):
    """Mirrors Encoder.forward: returns ((conv_outputs, input_lens), hidden, cell_state).

    With unpad_outputs=False (default, fastest) conv_outputs is returned in its
    padded (B_pad, T_pad, E_pad) layout; consumers should slice lazily / fuse.
    """
    emb_table = params["embedding"]        # [V, E]
    bmat = params["B_matrix"]              # [q, E, E]
    w = params["W"]                        # [E, H]
    bias = params["bias"]                  # [1, H]

    B, T = tokens.shape
    E = emb_table.shape[1]
    H = w.shape[1]
    q = bmat.shape[0]

    # --- TPU-friendly shapes & chip-aware block size ------------------------
    E_pad = pl.cdiv(E, 128) * 128          # lane dim multiple of 128
    T_pad = pl.cdiv(T, 8) * 8              # sublane dim multiple of 8
    itemsize = jnp.dtype(compute_dtype).itemsize
    # Per-tap dots once the MXU is already full width (>= 256 lanes): bounds
    # the f32 matmul temp without losing MXU utilization.
    split_taps = E_pad >= 256

    vmem_cap = _vmem_capacity_bytes()
    block_b = _choose_block_b(B, T_pad, E_pad, q, split_taps, itemsize,
                              vmem_cap, requested=block_b)
    B_pad = pl.cdiv(B, block_b) * block_b
    n_blocks = B_pad // block_b
    rows_blk = block_b * T_pad

    est = _estimate_vmem_bytes(block_b, T_pad, E_pad, q, split_taps, itemsize)
    # Never request the whole physical VMEM (leave room for compiler scratch);
    # on 128 MiB parts this naturally raises the cap past 64 MiB.
    vmem_limit = int(min(max(int(est * 1.25), 32 << 20), int(0.875 * vmem_cap)))

    lens = input_lens.astype(jnp.int32)
    tokens_p = jnp.pad(tokens, ((0, B_pad - B), (0, T_pad - T)))
    lens_p = jnp.pad(lens, (0, B_pad - B))                            # padded rows: len 0

    # --- XLA-side glue: embedding lookup + pos-enc + length mask ------------
    pe = positional_encoding(T_pad, E)                                # [T_pad, E]
    emb = jnp.take(emb_table, tokens_p, axis=0)                       # [B_pad, T_pad, E]
    t_idx = jnp.arange(T_pad, dtype=jnp.int32)
    lenmask = (t_idx[None, :] < lens_p[:, None]).astype(jnp.float32)  # [B_pad, T_pad]

    # NOTE: pre-masking x by length here is REQUIRED for kernel correctness —
    # the in-kernel pltpu.roll wraps across sequence boundaries and the
    # in-kernel boundary mask only zeroes rows whose source time index falls
    # outside [0, T_pad); rows beyond a sequence's true length must already be
    # zero so they cannot leak into neighbouring time steps / sequences.
    x = (emb + pe[None]) * lenmask[:, :, None]
    x = jnp.pad(x, ((0, 0), (0, 0), (0, E_pad - E))).astype(compute_dtype)
    x2 = x.reshape(B_pad * T_pad, E_pad)                              # [rows, E_pad]

    # Stacked, zero-padded B matrices: bstk[:, k*E_pad:(k+1)*E_pad] == B[k].
    bpad = jnp.pad(bmat, ((0, 0), (0, E_pad - E), (0, E_pad - E)))
    bstk = jnp.transpose(bpad, (1, 0, 2)).reshape(E_pad, q * E_pad).astype(compute_dtype)

    kernel = functools.partial(encoder_conv_kernel, seq_len=T_pad, q_size=q,
                               block_b=block_b, split_taps=split_taps)

    conv_pad, comb3 = pl.pallas_call(
        kernel,
        out_shape=(
            # conv written back in the (narrow) compute dtype: largest HBM stream.
            jax.ShapeDtypeStruct((B_pad, T_pad, E_pad), compute_dtype),
            jax.ShapeDtypeStruct((n_blocks, block_b, E_pad), jnp.float32),
        ),
        grid_spec=pltpu.PrefetchScalarGridSpec(
            num_scalar_prefetch=1,                       # lens -> SMEM
            grid=(n_blocks,),
            in_specs=[
                pl.BlockSpec((rows_blk, E_pad), lambda b, lens: (b, 0)),      # x
                pl.BlockSpec((E_pad, q * E_pad), lambda b, lens: (0, 0)),     # stacked B
            ],
            out_specs=[
                pl.BlockSpec((block_b, T_pad, E_pad), lambda b, lens: (b, 0, 0)),  # conv
                pl.BlockSpec((1, block_b, E_pad), lambda b, lens: (b, 0, 0)),      # combine
            ],
        ),
        compiler_params=pltpu.CompilerParams(
            dimension_semantics=("parallel",),
            vmem_limit_bytes=vmem_limit,
        ),
    )(lens_p, x2, bstk)

    # Tiny batched Linear + ReLU stays in XLA (keeps W out of kernel VMEM).
    combine = comb3.reshape(B_pad, E_pad)[:B, :E]                     # [B, E] f32
    cell = jnp.maximum(jnp.dot(combine, w) + bias, 0.0)               # [B, H]
    hidden = cell.reshape(B, 1, H)                                    # torch: clone
    cell_state = jnp.transpose(hidden, (1, 0, 2))                     # [1, B, H]

    if unpad_outputs:
        conv_outputs = conv_pad[:B, :T, :E].astype(jnp.float32)
    else:
        conv_outputs = conv_pad        # padded view; consumer slices / fuses lazily
    return (conv_outputs, input_lens), hidden, cell_state


# ---------------------------------------------------------------------------
# Pure-JAX reference (for correctness check only)
# ---------------------------------------------------------------------------
def encoder_reference(tokens, input_lens, params):
    emb_table = params["embedding"]
    bmat = params["B_matrix"]
    w = params["W"]
    bias = params["bias"]
    B, T = tokens.shape
    E = emb_table.shape[1]
    q = bmat.shape[0]
    half = q // 2

    x = jnp.take(emb_table, tokens, axis=0) + positional_encoding(T, E)[None]
    mask = (jnp.arange(T)[None, :] < input_lens[:, None]).astype(jnp.float32)
    x = x * mask[:, :, None]

    xp = jnp.pad(x, ((0, 0), (half, half), (0, 0)))
    conv = jnp.zeros((B, T, E), jnp.float32)
    for k in range(q):
        conv = conv + jnp.einsum("bte,ef->btf", xp[:, k:k + T], bmat[k])
    conv = conv * mask[:, :, None]

    combine = jnp.sum(conv, axis=1)
    cell = jnp.maximum(combine @ w + bias, 0.0)
    hidden = cell.reshape(B, 1, -1)
    return conv, hidden, jnp.transpose(hidden, (1, 0, 2))


# ---------------------------------------------------------------------------
if __name__ == "__main__":
    root = jax.random.PRNGKey(0)

    def make_case(key, B, T, E, H, q, V, lens_list, scale):
        k1, k2, k3, k4, k5 = jax.random.split(key, 5)
        tokens = jax.random.randint(k1, (B, T), 0, V, dtype=jnp.int32)
        input_lens = jnp.array(lens_list, dtype=jnp.int32)   # descending lengths
        params = {
            "embedding": scale * jax.random.normal(k2, (V, E), jnp.float32),
            "B_matrix":  scale * jax.random.normal(k3, (q, E, E), jnp.float32),
            "W":         scale * jax.random.normal(k4, (E, H), jnp.float32),
            "bias":      scale * jax.random.normal(k5, (1, H), jnp.float32),
        }
        return tokens, input_lens, params

    # (name, B, T, E, H, q, V, lens, scale, compute_dtype, tol)
    cases = [
        ("bf16_wide_dot",  2,  8,  32, 32, 3, 50, [8, 5],             0.10, jnp.bfloat16, 1e-1),
        ("bf16_split_tap", 5, 12, 200, 48, 5, 64, [12, 10, 9, 7, 4],  0.03, jnp.bfloat16, 1e-1),
        ("f32_tight",      3,  8,  32, 32, 3, 50, [8, 6, 3],          0.10, jnp.float32,  3e-2),
    ]
    keys = jax.random.split(root, len(cases))
    for (name, B, T, E, H, q, V, lens, scale, cdtype, tol), ck in zip(cases, keys):
        tokens, input_lens, params = make_case(ck, B, T, E, H, q, V, lens, scale)

        (conv_pad, lens_out), hidden, cell_state = encoder_forward(
            tokens, input_lens, params, compute_dtype=cdtype)
        jax.block_until_ready((conv_pad, hidden, cell_state))

        # Test-only un-pad (production consumers keep / fuse the padded view).
        conv = conv_pad[:B, :T, :E].astype(jnp.float32)

        assert conv.shape == (B, T, E), name
        assert hidden.shape == (B, 1, H), name
        assert cell_state.shape == (1, B, H), name

        conv_ref, hidden_ref, cell_ref = encoder_reference(tokens, input_lens, params)
        assert bool(jnp.allclose(conv, conv_ref, rtol=tol, atol=tol)), name
        assert bool(jnp.allclose(hidden, hidden_ref, rtol=tol, atol=tol)), name
        assert bool(jnp.allclose(cell_state, cell_ref, rtol=tol, atol=tol)), name

    print("KERNEL_OK")
</pallas_src>

<mosaic_0001>
module attributes {stable_mosaic.version = 11 : i64} {
  func.func @encoder_conv_kernel(%arg0: i32, %arg1: memref<2xi32, #tpu.memory_space<smem>>, %arg2: memref<8x128xbf16, #tpu.memory_space<vmem>>, %arg3: memref<128x384xbf16, #tpu.memory_space<vmem>>, %arg4: memref<1x8x128xbf16, #tpu.memory_space<vmem>>, %arg5: memref<1x1x128xf32, #tpu.memory_space<vmem>>) attributes {dimension_semantics = [#tpu.dimension_semantics<parallel>], iteration_bounds = array<i64: 2>, scalar_prefetch = 1 : i64, scratch_operands = 0 : i64, tpu.core_type = #tpu.core_type<tc>, window_params = [{transform_indices = @transform_0, window_bounds = array<i64: 8, 128>}, {pipeline_mode = #tpu.pipeline_mode<synchronous>, transform_indices = @transform_1, window_bounds = array<i64: 128, 384>}, {transform_indices = @transform_2, window_bounds = array<i64: 1, 8, 128>}, {transform_indices = @transform_3, window_bounds = array<i64: 1, 1, 128>}]} {
    %c0 = arith.constant 0 : index
    %c0_0 = arith.constant 0 : index
    %0 = vector.load %arg2[%c0, %c0_0] : memref<8x128xbf16, #tpu.memory_space<vmem>>, vector<8x128xbf16>
    %1 = tpu.iota {dimensions = array<i32: 0>} : vector<8x1xi32>
    %c0_1 = arith.constant 0 : index
    %c0_2 = arith.constant 0 : index
    %2 = vector.load %arg3[%c0_1, %c0_2] : memref<128x384xbf16, #tpu.memory_space<vmem>>, vector<128x384xbf16>
    %cst = arith.constant dense<0.000000e+00> : vector<8x384xf32>
    %3 = tpu.matmul %0, %2, %cst {dimension_numbers = #tpu.dot_dimension_numbers<[1], [0], [0], [1], [0, 0, 1, 1], [], []>} : vector<8x128xbf16>, vector<128x384xbf16>, vector<8x384xf32> -> vector<8x384xf32>
    %cst_3 = arith.constant 0.000000e+00 : f32
    %4 = vector.broadcast %cst_3 : f32 to vector<8x128xf32>
    %5 = vector.extract_strided_slice %3 {offsets = [0, 0], sizes = [8, 128], strides = [1, 1]} : vector<8x384xf32> to vector<8x128xf32>
    %c1_i32 = arith.constant 1 : i32
    %6 = tpu.dynamic_rotate %5 by %c1_i32 dim 0 : vector<8x128xf32>, i32 -> vector<8x128xf32>
    %c-1_i32 = arith.constant -1 : i32
    %7 = vector.broadcast %c-1_i32 : i32 to vector<8x1xi32>
    %8 = arith.addi %1, %7 : vector<8x1xi32>
    %c0_i32 = arith.constant 0 : i32
    %9 = vector.broadcast %c0_i32 : i32 to vector<8x1xi32>
    %10 = arith.cmpi sge, %8, %9 : vector<8x1xi32>
    %c-1_i32_4 = arith.constant -1 : i32
    %11 = vector.broadcast %c-1_i32_4 : i32 to vector<8x1xi32>
    %12 = arith.addi %1, %11 : vector<8x1xi32>
    %c8_i32 = arith.constant 8 : i32
    %13 = vector.broadcast %c8_i32 : i32 to vector<8x1xi32>
    %14 = arith.cmpi slt, %12, %13 : vector<8x1xi32>
    %15 = arith.andi %10, %14 : vector<8x1xi1>
    %16 = arith.extui %15 : vector<8x1xi1> to vector<8x1xi32>
    %17 = arith.sitofp %16 : vector<8x1xi32> to vector<8x1xf32>
    %18 = vector.broadcast %17 : vector<8x1xf32> to vector<8x128xf32>
    %19 = arith.mulf %6, %18 : vector<8x128xf32>
    %20 = arith.addf %4, %19 : vector<8x128xf32>
    %21 = vector.extract_strided_slice %3 {offsets = [0, 128], sizes = [8, 128], strides = [1, 1]} : vector<8x384xf32> to vector<8x128xf32>
    %22 = arith.addf %20, %21 : vector<8x128xf32>
    %23 = vector.extract_strided_slice %3 {offsets = [0, 256], sizes = [8, 128], strides = [1, 1]} : vector<8x384xf32> to vector<8x128xf32>
    %c7_i32 = arith.constant 7 : i32
    %24 = tpu.dynamic_rotate %23 by %c7_i32 dim 0 : vector<8x128xf32>, i32 -> vector<8x128xf32>
    %c1_i32_5 = arith.constant 1 : i32
    %25 = vector.broadcast %c1_i32_5 : i32 to vector<8x1xi32>
    %26 = arith.addi %1, %25 : vector<8x1xi32>
    %c0_i32_6 = arith.constant 0 : i32
    %27 = vector.broadcast %c0_i32_6 : i32 to vector<8x1xi32>
    %28 = arith.cmpi sge, %26, %27 : vector<8x1xi32>
    %c1_i32_7 = arith.constant 1 : i32
    %29 = vector.broadcast %c1_i32_7 : i32 to vector<8x1xi32>
    %30 = arith.addi %1, %29 : vector<8x1xi32>
    %c8_i32_8 = arith.constant 8 : i32
    %31 = vector.broadcast %c8_i32_8 : i32 to vector<8x1xi32>
    %32 = arith.cmpi slt, %30, %31 : vector<8x1xi32>
    %33 = arith.andi %28, %32 : vector<8x1xi1>
    %34 = arith.extui %33 : vector<8x1xi1> to vector<8x1xi32>
    %35 = arith.sitofp %34 : vector<8x1xi32> to vector<8x1xf32>
    %36 = vector.broadcast %35 : vector<8x1xf32> to vector<8x128xf32>
    %37 = arith.mulf %24, %36 : vector<8x128xf32>
    %38 = arith.addf %22, %37 : vector<8x128xf32>
    %c1_i32_9 = arith.constant 1 : i32
    %39 = arith.muli %arg0, %c1_i32_9 : i32
    %c0_i32_10 = arith.constant 0 : i32
    %40 = arith.addi %39, %c0_i32_10 : i32
    %41 = arith.index_cast %40 : i32 to index
    %42 = memref.load %arg1[%41] : memref<2xi32, #tpu.memory_space<smem>>
    %43 = vector.broadcast %42 : i32 to vector<8x1xi32>
    %44 = arith.cmpi slt, %1, %43 : vector<8x1xi32>
    %45 = arith.extui %44 : vector<8x1xi1> to vector<8x1xi32>
    %46 = arith.sitofp %45 : vector<8x1xi32> to vector<8x1xf32>
    %47 = vector.broadcast %46 : vector<8x1xf32> to vector<8x128xf32>
    %48 = arith.mulf %38, %47 : vector<8x128xf32>
    %49 = arith.truncf %48 : vector<8x128xf32> to vector<8x128xbf16>
    %c0_11 = arith.constant 0 : index
    %c0_12 = arith.constant 0 : index
    %c0_13 = arith.constant 0 : index
    %50 = vector.load %arg4[%c0_11, %c0_12, %c0_13] : memref<1x8x128xbf16, #tpu.memory_space<vmem>>, vector<1x8x128xbf16>
    %51 = vector.shape_cast %50 : vector<1x8x128xbf16> to vector<8x128xbf16>
    %52 = vector.shape_cast %49 : vector<8x128xbf16> to vector<1x8x128xbf16>
    tpu.vector_store %arg4[%c0_11, %c0_12, %c0_13], %52 {strides = array<i32>} : memref<1x8x128xbf16, #tpu.memory_space<vmem>>, vector<1x8x128xbf16>,
    %cst_14 = arith.constant dense<0.000000e+00> : vector<128xf32>
    %53 = vector.multi_reduction <add>, %48, %cst_14 [0] : vector<8x128xf32> to vector<128xf32>
    %54 = vector.shape_cast %53 : vector<128xf32> to vector<1x128xf32>
    %c0_15 = arith.constant 0 : index
    %c0_16 = arith.constant 0 : index
    %c0_17 = arith.constant 0 : index
    %55 = vector.load %arg5[%c0_15, %c0_16, %c0_17] : memref<1x1x128xf32, #tpu.memory_space<vmem>>, vector<1x1x128xf32>
    %56 = vector.shape_cast %55 : vector<1x1x128xf32> to vector<1x128xf32>
    %57 = vector.shape_cast %54 : vector<1x128xf32> to vector<1x1x128xf32>
    tpu.vector_store %arg5[%c0_15, %c0_16, %c0_17], %57 {strides = array<i32>} : memref<1x1x128xf32, #tpu.memory_space<vmem>>, vector<1x1x128xf32>,
    return
  }
  func.func @transform_0(%arg0: i32, %arg1: memref<2xi32, #tpu.memory_space<smem>>) -> (i32, i32) {
    %c0_i32 = arith.constant 0 : i32
    %c0_i32_0 = arith.constant 0 : i32
    return %arg0, %c0_i32 : i32, i32
  }
  func.func @transform_1(%arg0: i32, %arg1: memref<2xi32, #tpu.memory_space<smem>>) -> (i32, i32) {
    %c0_i32 = arith.constant 0 : i32
    %c0_i32_0 = arith.constant 0 : i32
    %c0_i32_1 = arith.constant 0 : i32
    return %c0_i32, %c0_i32_0 : i32, i32
  }
  func.func @transform_2(%arg0: i32, %arg1: memref<2xi32, #tpu.memory_space<smem>>) -> (i32, i32, i32) {
    %c0_i32 = arith.constant 0 : i32
    %c0_i32_0 = arith.constant 0 : i32
    %c0_i32_1 = arith.constant 0 : i32
    return %arg0, %c0_i32, %c0_i32_0 : i32, i32, i32
  }
  func.func @transform_3(%arg0: i32, %arg1: memref<2xi32, #tpu.memory_space<smem>>) -> (i32, i32, i32) {
    %c0_i32 = arith.constant 0 : i32
    %c0_i32_0 = arith.constant 0 : i32
    %c0_i32_1 = arith.constant 0 : i32
    return %arg0, %c0_i32, %c0_i32_0 : i32, i32, i32
  }
}

</mosaic_0001>

<bundles_post_ra>
// kernel: tpu_custom_call.1
= control target key start
LH: loop header
LB: loop body
LE: loop exit
PB: predicated region body
PF: predicated region fallthrough
CT: control target
= control target key end

     0   :  { %s1273_s0 = inlined_call_operand.hbm [shape: s32[2], index: 0, kind: input, shape index: {}]   ;;  %s1274_s1 = inlined_call_operand.hbm [shape: bf16[16,128], index: 1, kind: input, shape index: {}]   ;;  %s1275_s2 = inlined_call_operand.hbm [shape: bf16[128,384], index: 2, kind: input, shape index: {}]   ;;  %s1276_s3 = inlined_call_operand.hbm [shape: bf16[2,8,128], index: 3, kind: output, shape index: {0}]   ;;  %s1277_s4 = inlined_call_operand.hbm [shape: f32[2,1,128], index: 4, kind: output, shape index: {1}]  }
   0x1   :  { %s805_s17 = scalar_lea.hbm %s1273_s0, 16 }
   0x2   :  { %p806_p0 = scmp.ne.s32.totalorder %s1273_s0, %s805_s17  ;;  %p809_p1 = scmp.lt.u32.totalorder %s805_s17, %s1273_s0 }
   0x4   :  { %p811_p2 = pnand %p809_p1, %p806_p0 }
   0x6   :  { %814 = shalt.err (!%p811_p2)  }
   0x7   :  { %s979_s22 = smov [#allocation3]  }
   0x8   :  { %11 = dma.hbm_to_smem %s1273_s0, 16, %s979_s22, [#allocation2] }
   0x9   :  { %945 = dma.done.wait [#allocation2], 16 }
   0xa   :  { %946 = vsyncadd [#allocation2], 4294967280 }
   0xb   :  { %13 = sfence }
   0xc   :  { %14 = vsyncpa [#allocation5], 0 }
   0xd   :  { %16 = vsyncpa [#allocation5 + $0x1], 0 }
   0xe   :  { %17 = vsyncpa [#allocation8], 0 }
   0xf   :  { %18 = vsyncpa [#allocation6], 0 }
  0x10   :  { %20 = vsyncpa [#allocation6 + $0x1], 0 }
  0x11   :  { %21 = vsyncpa [#allocation11], 0 }
  0x12   :  { %23 = vsyncpa [#allocation11 + $0x1], 0  ;;  %s1026_s25 = smov 0   ;;  %s1028_s26 = smov 0  }
  0x13   :  { %s1030_s27 = smov 0   ;;  %s1032_s28 = smov 0  }
  0x14 LB: > { %s1047_s0 = sadd.s32 4294967295, %s977_s28   ;;  %s634_s29 = sadd.s32 4294967294, %s977_s28   ;;  %s977_s28 = sphi %s1032_s28, %s1297_s28   ;;  %s973_s27 = sphi %s1030_s27, %s1296_s27   ;;  %s969_s26 = sphi %s1028_s26, %s1295_s26   ;;  %s965_s25 = sphi %s1026_s25, %s1294_s25  }
  0x15   : > { %p49_p3 = scmp.ne.s32.totalorder %s969_s26, %s965_s25  ;;  %p1278_p4 = scmp.eq.s32.totalorder %s1047_s0, 0 }
  0x16   : > { %p100_p6 = scmp.eq.s32.totalorder %s634_s29, 1  ;;  %p635_p8 = scmp.ge.s32.totalorder %s977_s28, 1 }
  0x17   : > { %p1056_p7 = por %p1278_p4, %p49_p3  ;;  %p133_p10 = scmp.lt.s32.totalorder %s977_s28, 3 }
  0x18   : > { %p1061_p9 = por %p100_p6, %p49_p3  ;;  %s980_s7 = smov [#allocation7]  }
  0x19   : > { %s1281_s30 = scalar_select %p1056_p7, 1, 0 }
  0x1a   : > { %s1282_s5 = scalar_select %p1061_p9, 1, 0 }
  0x1b   : > { %p1066_p11 = pnand %p635_p8, %p133_p10  ;;  %s145_s8 = sshll.u32 %s980_s7, 4  ;;  %s1070_s8 = int_to_ptr.vmem [resolvable:$true] %s145_s8 }
  0x1c   : > { %s1082_s10 = sadd.s32 1, %s977_s28   ;;  %s36_s11 = sadd.s32 1, %s973_s27 }
  0x1d   : > { %s1283_s6 = scalar_select %p1066_p11, 1, 0 }
  0x1e   : > { %p715_p12 = pneg %p1066_p11  ;;  %s33_s12 = ssub.s32 %s977_s28, %s1082_s10 }
  0x1f   : > { %s815_s15 = scalar_lea.hbm %s1275_s2, 3072 }
  0x20   : > { %p1077_p0 = pnand %p715_p12, %p1278_p4  ;;  %p816_p1 = scmp.ne.s32.totalorder %s1275_s2, %s815_s15 }
  0x21   : > { %p822_p8 = scmp.lt.u32.totalorder %s815_s15, %s1275_s2 }
  0x22   : > { %p817_p2 = pneg %p1077_p0 }
  0x24   : > { %p818_p3 = pnand %p817_p2, %p816_p1 }
  0x26   : > { %p819_p6 = pneg %p818_p3 }
  0x28   : > { %p824_p10 = pnand %p822_p8, %p819_p6 }
  0x2a   : > { %827 = shalt.err (!%p824_p10)
}
  0x2b   : > { %s828_s20 = scalar_lea.vmem %s1070_s8, 3072  ;;  %p836_p5 = scmp.lt.s32.totalorder %s1070_s8, %s1070_s8 }
  0x2c   : > { %p829_p12 = scmp.ne.s32.totalorder %s1070_s8, %s828_s20  ;;  %p837_p9 = scmp.lt.s32.totalorder %s828_s20, %s828_s20 }
  0x2e   : > { %p831_p13 = pnand %p829_p12, %p817_p2  ;;  %p838_p7 = por %p837_p9, %p836_p5 }
  0x30   : > { %p832_p4 = pneg %p831_p13 }
  0x32   : > { %p839_p11 = pnand %p838_p7, %p832_p4 }
  0x34   : > { %842 = shalt.err (!%p839_p11)
}
  0x35   : > { %s981_s21 = smov 192   ;;  %s982_s22 = smov 12  }
  0x36   : > { %718 = dma.hbm_to_vmem [thread:$0]  (!%p1077_p0), %s1275_s2, 3072, %s1070_s8, [#allocation8], %s981_s21, %s981_s21, %s982_s22  }
  0x37   : > { %p34_p5 = scmp.eq.s32.totalorder %s33_s12, 0  ;;  %p43_p4 = scmp.ne.s32.totalorder %s973_s27, %s969_s26 }
  0x38   : > { %p44_p7 = scmp.eq.s32.totalorder %s977_s28, 0  ;;  %p731_p9 = scmp.lt.s32.totalorder %s977_s28, 2 }
  0x39   : > { %s1113_s29 = scalar_select %p34_p5, %s973_s27, %s36_s11  }
  0x3a   : > { %p45_p11 = por %p44_p7, %p43_p4  ;;  %p1285_p13 = scmp.eq.s32.totalorder %s1047_s0, 1 }
  0x3b   : > { %s159_s13 = sand.u32 1, %s973_s27   ;;  %s639_s14 = sshll.u32 %s977_s28, 6 }
  0x3c   : > { %p1117_p1 = por %p1285_p13, %p43_p4  ;;  %s638_s15 = sshll.u32 %s159_s13, 2 }
  0x3d   : > { %s1126_s17 = scalar_lea.hbm %s1274_s1, %s639_s14  ;;  %s163_s8 = scalar_lea.vmem [#allocation4], %s638_s15 }
  0x3e   : > { %s170_s11 = sshll.u32 %s163_s8, 4  ;;  %p1128_p0 = pnand %p731_p9, %p45_p11  ;;  %s1132_s11 = int_to_ptr.vmem [resolvable:$true] %s170_s11 }
  0x3f   : > { %s160_s18 = scalar_lea.sflag [#allocation5], %s159_s13  ;;  %s843_s19 = scalar_lea.hbm %s1126_s17, 64 }
  0x40   : > { %p844_p2 = scmp.ne.s32.totalorder %s1126_s17, %s843_s19  ;;  %p845_p3 = pneg %p1128_p0 }
  0x41   : > { %s848_s22 = scalar_lea.hbm %s1274_s1, 128  ;;  %p849_p10 = scmp.lt.u32.totalorder %s1126_s17, %s1274_s1 }
  0x42   : > { %p846_p6 = pnand %p845_p3, %p844_p2  ;;  %p850_p12 = scmp.lt.u32.totalorder %s848_s22, %s843_s19 }
  0x43   : > { %p852_p4 = scmp.lt.u32.totalorder %s843_s19, %s1126_s17 }
  0x44   : > { %p847_p8 = pneg %p846_p6  ;;  %p851_p5 = por %p850_p12, %p849_p10 }
  0x46   : > { %p853_p7 = por %p852_p4, %p851_p5 }
  0x48   : > { %p854_p9 = pnand %p853_p7, %p847_p8 }
  0x4a   : > { %857 = shalt.err (!%p854_p9)
}
  0x4b   : > { %s858_s13 = scalar_lea.vmem %s1132_s11, 64  ;;  %s983_s14 = smov [#allocation4]  }
  0x4c   : > { %p859_p11 = scmp.ne.s32.totalorder %s1132_s11, %s858_s13  ;;  %s863_s15 = sshll.u32 %s983_s14, 4  ;;  %s864_s15 = int_to_ptr.vmem [resolvable:$false] %s863_s15 }
  0x4d   : > { %s865_s9 = scalar_lea.vmem %s864_s15, 128  ;;  %p866_p6 = scmp.lt.s32.totalorder %s1132_s11, %s864_s15 }
  0x4e   : > { %p861_p13 = pnand %p859_p11, %p845_p3  ;;  %p867_p10 = scmp.lt.s32.totalorder %s865_s9, %s858_s13 }
  0x50   : > { %p862_p2 = pneg %p861_p13  ;;  %p868_p12 = por %p867_p10, %p866_p6 }
  0x52   : > { %p869_p5 = pnand %p868_p12, %p862_p2 }
  0x54   : > { %872 = shalt.err (!%p869_p5)
}
  0x55   : > { %722 = dma.hbm_to_vmem [thread:$0]  (!%p1128_p0), %s1126_s17, 64, %s1132_s11, %s160_s18  }
  0x56   : > { %p1288_p8 = scmp.ne.s32.totalorder %s1283_s6, 0 }
  0x57   : > { %s1162_s16 = sand.u32 (!%p1288_p8), 1, %s969_s26   ;;  %p1289_p3 = scmp.ne.s32.totalorder (!%p1288_p8), %s1281_s30, 0 }
  0x58   : > { %179 = sbr.rel (%p1288_p8) target bundleno = 396 (0x18c), region = 28  ;;  %s641_s8 = sshll.u32 (!%p1288_p8), %s1162_s16, 2 }
  0x59   : > { %s182_s19 = scalar_lea.sflag (!%p1288_p8), [#allocation5], %s1162_s16  ;;  %s1168_s20 = scalar_lea.vmem (!%p1288_p8), [#allocation4], %s641_s8 }
  0x5f   : > { %948 = dma.done.wait (%p1289_p3), %s182_s19, 64  }
  0x60   : > { %950 = vsyncadd (%p1289_p3), %s182_s19, 4294967232  ;;  %p1290_p0 = scmp.eq.s32.totalorder %s1047_s0, 0 }
  0x62   : > { %952 = dma.done.wait (%p1290_p0), [#allocation8], 3072   ;;  %p1291_p4 = pmov %p1290_p0 }
  0x63   : > { %v984_v0 = vmov 0.0   ;;  %vm985_vm0 = vmmov 0   ;;  %v986_v1 = vmov 0   ;;  %v773_v2 = vld [vmem:[#allocation7 + $0x4] ss:$12 sps:$4 sm:$0xff]   ;;  %v218_v27 = vlaneseq  ;;  %s480_s30 = sld [smem:[#allocation3 + %s1047_s0]] }
  0x64   : > { %954 = vsyncadd (%p1291_p4), [#allocation8], 4294964224  ;;  %685 = vmatprep.subr.bf16.mxu1 %v984_v0  ;;  %701 = vmatprep.mubr.msk.bf16.mxu1 %vm985_vm0, %v984_v0  ;;  %v775_v3 = vld [vmem:[#allocation7 + $0x8] ss:$12 sps:$4 sm:$0xff]   ;;  %v776_v4 = vld [vmem:[#allocation7] ss:$12 sps:$4 sm:$0xff]  }
  0x65   : > { %412 = vmatprep.mubr.bf16.mxu0 %v986_v1  ;;  %380 = vmatprep.subr.bf16.mxu0 %v773_v2  ;;  %v777_v5 = vld [vmem:[#allocation7 + $0x1c] ss:$12 sps:$4 sm:$0xff]   ;;  %v779_v6 = vld [vmem:[#allocation7 + $0x20] ss:$12 sps:$4 sm:$0xff]   ;;  %v780_v7 = vld [vmem:[#allocation7 + $0x18] ss:$12 sps:$4 sm:$0xff]  }
  0x66   : > { %686 = vmatpush3.bf16.msra.mxu1 %v775_v3  ;;  %381 = vmatpush1.bf16.msra.mxu0 %v776_v4  ;;  %v781_v8 = vld [vmem:[#allocation7 + $0x34] ss:$12 sps:$4 sm:$0xff]   ;;  %v783_v9 = vld [vmem:[#allocation7 + $0x38] ss:$12 sps:$4 sm:$0xff]   ;;  %v784_v10 = vld [vmem:[#allocation7 + $0x30] ss:$12 sps:$4 sm:$0xff]  }
  0x67   : > { %687 = vmatprep.subr.bf16.mxu1 %v984_v0  ;;  %382 = vmatprep.subr.bf16.mxu0 %v777_v5  ;;  %v785_v11 = vld [vmem:[#allocation7 + $0x4c] ss:$12 sps:$4 sm:$0xff]   ;;  %v787_v12 = vld [vmem:[#allocation7 + $0x50] ss:$12 sps:$4 sm:$0xff]   ;;  %v788_v13 = vld [vmem:[#allocation7 + $0x48] ss:$12 sps:$4 sm:$0xff]  }
  0x68   : > { %v789_v14 = vld [vmem:[#allocation7 + $0x64] ss:$12 sps:$4 sm:$0xff]   ;;  %v791_v15 = vld [vmem:[#allocation7 + $0x68] ss:$12 sps:$4 sm:$0xff]   ;;  %v792_v16 = vld [vmem:[#allocation7 + $0x60] ss:$12 sps:$4 sm:$0xff]  }
  0x69   : > { %v793_v17 = vld [vmem:[#allocation7 + $0x7c] ss:$12 sps:$4 sm:$0xff]   ;;  %v795_v18 = vld [vmem:[#allocation7 + $0x80] ss:$12 sps:$4 sm:$0xff]   ;;  %v796_v19 = vld [vmem:[#allocation7 + $0x78] ss:$12 sps:$4 sm:$0xff]   ;;  %v481_v37 = vstv %s480_s30 }
  0x6a   : > { %688 = vmatpush3.bf16.msra.mxu1 %v779_v6  ;;  %383 = vmatpush1.bf16.msra.mxu0 %v780_v7  ;;  %v797_v20 = vld [vmem:[#allocation7 + $0x94] ss:$12 sps:$4 sm:$0xff]   ;;  %v799_v21 = vld [vmem:[#allocation7 + $0x98] ss:$12 sps:$4 sm:$0xff]   ;;  %v800_v22 = vld [vmem:[#allocation7 + $0x90] ss:$12 sps:$4 sm:$0xff]  }
  0x6b   : > { %689 = vmatprep.subr.bf16.mxu1 %v984_v0  ;;  %384 = vmatprep.subr.bf16.mxu0 %v781_v8  ;;  %v801_v23 = vld [vmem:[#allocation7 + $0xac] ss:$12 sps:$4 sm:$0xff]   ;;  %v803_v24 = vld [vmem:[#allocation7 + $0xb0] ss:$12 sps:$4 sm:$0xff]   ;;  %v804_v25 = vld [vmem:[#allocation7 + $0xa8] ss:$12 sps:$4 sm:$0xff]  }
  0x6c   : > { %v217_v26 = vld [vmem:[%s1168_s20] sm:$0xf]  ;;  %v219_v28 = vshrl.u32 %v218_v27, 7  ;;  %s672_s6 = sshll.u32 %s1047_s0, 6  ;;  %s209_s17 = scalar_lea.vmem [#allocation9], %s641_s8 }
  0x6d   : > { %s513_s11 = sshll.u32 %s209_s17, 4  ;;  %s1198_s21 = scalar_lea.hbm %s1276_s3, %s672_s6  ;;  %s1200_s11 = int_to_ptr.vmem [resolvable:$true] %s513_s11 }
  0x6e   : > { %690 = vmatpush3.bf16.msra.mxu1 %v783_v9  ;;  %385 = vmatpush1.bf16.msra.mxu0 %v784_v10  ;;  %v472_v29 = vadd.s32 1, %v219_v28  ;;  %v462_v30 = vadd.s32 4294967295, %v219_v28  ;;  %vm482_vm3 = vcmp.lt.s32.totalorder %v219_v28, %v481_v37  ;;  %s496_s22 = scalar_lea.sflag [#allocation6], %s1162_s16  ;;  %s873_s23 = scalar_lea.vmem %s1200_s11, 64 }
  0x6f   : > { %691 = vmatprep.subr.bf16.mxu1 %v984_v0  ;;  %386 = vmatprep.subr.bf16.mxu0 %v785_v11  ;;  %v670_v47 = vsel %vm482_vm3, 1.0, %v984_v0  ;;  %p874_p7 = scmp.ne.s32.totalorder %s1200_s11, %s873_s23  ;;  %s987_s24 = smov [#allocation9]  }
  0x70   : > { %vm474_vm1 = vcmp.lt.s32.totalorder %v472_v29, 8  ;;  %vm463_vm2 = vcmp.ge.s32.totalorder %v462_v30, 0  ;;  %s877_s13 = sshll.u32 %s987_s24, 4  ;;  %s878_s13 = int_to_ptr.vmem [resolvable:$false] %s877_s13 }
  0x71   : > { %v669_v33 = vsel %vm474_vm1, 1.0, %v984_v0  ;;  %v668_v36 = vsel %vm463_vm2, 1.0, %v984_v0  ;;  %p875_p9 = pnand %p874_p7, %p1117_p1  ;;  %s879_s14 = scalar_lea.vmem %s878_s13, 128 }
  0x72   : > { %692 = vmatpush3.bf16.msra.mxu1 %v787_v12  ;;  %387 = vmatpush1.bf16.msra.mxu0 %v788_v13  ;;  %p880_p13 = scmp.lt.s32.totalorder %s1200_s11, %s878_s13  ;;  %p881_p2 = scmp.lt.s32.totalorder %s879_s14, %s873_s23 }
  0x73   : > { %693 = vmatprep.subr.bf16.mxu1 %v984_v0  ;;  %388 = vmatprep.subr.bf16.mxu0 %v789_v14  ;;  %p876_p11 = pneg %p875_p9 }
  0x74   : > { %p882_p6 = por %p881_p2, %p880_p13 }
  0x76   : > { %694 = vmatpush3.bf16.msra.mxu1 %v791_v15  ;;  %389 = vmatpush1.bf16.msra.mxu0 %v792_v16  ;;  %p883_p10 = pnand %p882_p6, %p876_p11 }
  0x77   : > { %695 = vmatprep.subr.bf16.mxu1 %v984_v0  ;;  %390 = vmatprep.subr.bf16.mxu0 %v793_v17 }
  0x7a   : > { %696 = vmatpush3.bf16.msra.mxu1 %v795_v18  ;;  %391 = vmatpush1.bf16.msra.mxu0 %v796_v19 }
  0x7b   : > { %697 = vmatprep.subr.bf16.mxu1 %v984_v0  ;;  %392 = vmatprep.subr.bf16.mxu0 %v797_v20 }
  0x7e   : > { %698 = vmatpush3.bf16.msra.mxu1 %v799_v21  ;;  %393 = vmatpush1.bf16.msra.mxu0 %v800_v22 }
  0x7f   : > { %699 = vmatprep.subr.bf16.mxu1 %v984_v0  ;;  %394 = vmatprep.subr.bf16.mxu0 %v801_v23 }
  0x82   : > { %700 = vmatpush3.bf16.msra.mxu1 %v803_v24  ;;  %395 = vmatpush1.bf16.msra.mxu0 %v804_v25 }
  0x85   : > { %702 = vmatmul.mubr.bf16.vlgmr.msra.gmra.mrb[0].mxu1 %v217_v26  ;;  %413 = vmatmul.mubr.bf16.vlgmr.msra.gmra.mrb[0].mxu0 %v217_v26 }
 0x158   : > { %v455_v31 = vpop.f32.mrb[0].mxu1  ;;  %v414_v34 = vpop.f32.mrb[0].mxu0 }
 0x159   : > { %v471_v32 = vrot.slane %v455_v31, 1  ;;  %v703_v35 = vpop.f32.mrb[1].mxu1  ;;  %v461_v38 = vrot.slane %v414_v34, 7  ;;  %v416_v39 = vpop.f32.mrb[1].mxu0 }
 0x15a   : > { %v458_v40 = vpop.f32.mrb[2].mxu1  ;;  %v418_v41 = vpop.f32.mrb[2].mxu0 }
 0x15b   : > { %v704_v42 = vpop.f32.mrb[3].mxu1  ;;  %v478_v43 = vmul.f32 %v669_v33, %v471_v32  ;;  %v468_v44 = vmul.f32 %v668_v36, %v461_v38  ;;  %v419_v45 = vpop.f32.mrb[3].mxu0 }
 0x15d   : > { %v470_v46 = vadd.f32 %v468_v44, %v416_v39 }
 0x15f   : > { %v479_v48 = vadd.f32 %v478_v43, %v470_v46 }
 0x161   : > { %v485_v49 = vmul.f32 %v670_v47, %v479_v48 }
 0x163   : > { %v486_v50 = vpack.c.bf16 %v485_v49, %v485_v49  ;;  %v488_v51 = vrot.slane %v485_v49, 4 }
 0x165   : > { %v489_v52 = vadd.f32 %v488_v51, %v485_v49  ;;  %487 = vst [vmem:[%s209_s17] sm:$0xf] %v486_v50 }
 0x166   : > { %886 = shalt.err (!%p883_p10)
}
 0x167   : > { %s887_s15 = scalar_lea.hbm %s1198_s21, 64  ;;  %s891_s19 = scalar_lea.hbm %s1276_s3, 128 }
 0x168   : > { %p888_p12 = scmp.ne.s32.totalorder %s1198_s21, %s887_s15  ;;  %p892_p3 = scmp.lt.u32.totalorder %s1198_s21, %s1276_s3 }
 0x169   : > { %p893_p0 = scmp.lt.u32.totalorder %s891_s19, %s887_s15  ;;  %p895_p7 = scmp.lt.u32.totalorder %s887_s15, %s1198_s21 }
 0x16a   : > { %p889_p5 = pnand %p888_p12, %p1117_p1 }
 0x16b   : > { %p894_p4 = por %p893_p0, %p892_p3 }
 0x16c   : > { %p890_p8 = pneg %p889_p5 }
 0x16d   : > { %p896_p9 = por %p895_p7, %p894_p4 }
 0x16f   : > { %p897_p11 = pnand %p896_p9, %p890_p8 }
 0x171   : > { %900 = shalt.err (!%p897_p11)
}
 0x172   : > { %711 = dma.vmem_to_hbm [thread:$0]  (%p1117_p1), %s1200_s11, 64, %s1198_s21, %s496_s22   ;;  %v490_v53 = vrot.slane %v489_v52, 2 }
 0x173   : > { %s673_s6 = sshll.u32 %s1047_s0, 4  ;;  %s215_s17 = scalar_lea.vmem [#allocation10], %s1162_s16 }
 0x174   : > { %v491_v54 = vadd.f32 %v490_v53, %v489_v52  ;;  %s526_s12 = sshll.u32 %s215_s17, 4  ;;  %s1229_s24 = scalar_lea.hbm %s1277_s4, %s673_s6  ;;  %s1231_s12 = int_to_ptr.vmem [resolvable:$true] %s526_s12 }
 0x175   : > { %s501_s13 = scalar_lea.sflag [#allocation11], %s1162_s16  ;;  %s901_s11 = scalar_lea.vmem %s1231_s12, 16 }
 0x176   : > { %v492_v55 = vrot.slane %v491_v54, 1  ;;  %p902_p13 = scmp.ne.s32.totalorder %s1231_s12, %s901_s11  ;;  %s988_s0 = smov [#allocation10]  }
 0x177   : > { %s905_s21 = sshll.u32 %s988_s0, 4  ;;  %s906_s21 = int_to_ptr.vmem [resolvable:$false] %s905_s21 }
 0x178   : > { %v493_v56 = vadd.f32 %v492_v55, %v491_v54  ;;  %p903_p2 = pnand %p902_p13, %p1117_p1  ;;  %s907_s22 = scalar_lea.vmem %s906_s21, 32 }
 0x179   : > { %p908_p10 = scmp.lt.s32.totalorder %s1231_s12, %s906_s21  ;;  %p909_p12 = scmp.lt.s32.totalorder %s907_s22, %s901_s11 }
 0x17a   : > { %494 = vst [vmem:[%s215_s17] sm:$0x1] %v493_v56  ;;  %p904_p6 = pneg %p903_p2 }
 0x17b   : > { %p910_p5 = por %p909_p12, %p908_p10 }
 0x17d   : > { %p911_p8 = pnand %p910_p5, %p904_p6 }
 0x17f   : > { %914 = shalt.err (!%p911_p8)
}
 0x180   : > { %s915_s16 = scalar_lea.hbm %s1229_s24, 16  ;;  %s919_s9 = scalar_lea.hbm %s1277_s4, 32 }
 0x181   : > { %p916_p3 = scmp.ne.s32.totalorder %s1229_s24, %s915_s16  ;;  %p920_p7 = scmp.lt.u32.totalorder %s1229_s24, %s1277_s4 }
 0x182   : > { %p921_p9 = scmp.lt.u32.totalorder %s919_s9, %s915_s16  ;;  %p923_p13 = scmp.lt.u32.totalorder %s915_s16, %s1229_s24 }
 0x183   : > { %p917_p0 = pnand %p916_p3, %p1117_p1 }
 0x184   : > { %p922_p11 = por %p921_p9, %p920_p7 }
 0x185   : > { %p918_p4 = pneg %p917_p0 }
 0x186   : > { %p924_p2 = por %p923_p13, %p922_p11 }
 0x188   : > { %p925_p6 = pnand %p924_p2, %p918_p4 }
 0x18a   : > { %928 = shalt.err (!%p925_p6)
}
 0x18b   : > { %712 = dma.vmem_to_hbm [thread:$0]  (%p1117_p1), %s1231_s12, 16, %s1229_s24, %s501_s13  }
 0x18c PF: > { %s538_s20 = sand.u32 1, %s965_s25   ;;  %p1292_p10 = scmp.ne.s32.totalorder %s1282_s5, 0 }
 0x18d   : > { %p1293_p12 = scmp.ge.s32.totalorder %s977_s28, 2  ;;  %s539_s30 = scalar_lea.sflag [#allocation6], %s538_s20 }
 0x18f   : > { %p724_p5 = pnand %p1293_p12, %p1292_p10 }
 0x191   : > { %956 = dma.done.wait (!%p724_p5), %s539_s30, 64  }
 0x192   : > { %958 = vsyncadd (!%p724_p5), %s539_s30, 4294967232  ;;  %s548_s6 = scalar_lea.sflag [#allocation11], %s538_s20 }
 0x193   : > { %960 = dma.done.wait (!%p724_p5), %s548_s6, 16  }
 0x194   : > { %962 = vsyncadd (!%p724_p5), %s548_s6, 4294967280  ;;  %p26_p1 = scmp.ge.s32.totalorder %s1082_s10, 4   ;;  %s1294_s25 = smov %s969_s26 }
 0x195   : > { %s1295_s26 = smov %s973_s27  ;;  %s1296_s27 = smov %s1113_s29 }
 0x196   : > { %s1297_s28 = smov %s1082_s10  ;;  %28 = sbr.rel (!%p26_p1) target bundleno = 20 (0x14), region = 94 }
 0x19d   :  { %552 = vsyncpa [#allocation5], 1 }
 0x19e   :  { %554 = vsyncpa [#allocation5 + $0x1], 1 }
 0x19f   :  { %555 = vsyncpa [#allocation8], 1 }
 0x1a0   :  { %556 = vsyncpa [#allocation6], 1 }
 0x1a1   :  { %558 = vsyncpa [#allocation6 + $0x1], 1 }
 0x1a2   :  { %559 = vsyncpa [#allocation11], 1 }
 0x1a3   :  { %561 = vsyncpa [#allocation11 + $0x1], 1 }

</bundles_post_ra>
